<compile_context>
chip_gen: v7x
topology: tpu7x:2x2x1
jax: 0.10.0
libtpu: 0.0.40
codegen_flags: <defaults>
</compile_context>

<pallas_src>
import functools

import jax
import jax.numpy as jnp
from jax import lax
from jax.experimental import pallas as pl
from jax.experimental.pallas import tpu as pltpu


def _splitmix32(z):
    """Cheap stateless 32-bit mixer (splitmix32 finalizer); pure VPU int ops."""
    z = z ^ (z >> 16)
    z = z * jnp.uint32(0x85EBCA6B)
    z = z ^ (z >> 13)
    z = z * jnp.uint32(0xC2B2AE35)
    z = z ^ (z >> 16)
    return z


def _pe_dropout_kernel(seed_ref, x_ref, pe_ref, o_ref, *, p, block_rows, batch,
                       d_model):
    # x_ref: (TS, B, D), pe_ref: (TS, 1, D) -> broadcast add over batch axis.
    y = x_ref[...] + pe_ref[...]
    if p > 0.0:
        shape = y.shape
        # Global (grid-invariant) element index -> unique random bits per
        # element, independent of tiling and of which TensorCore runs the tile.
        s_idx = (lax.broadcasted_iota(jnp.int32, shape, 0)
                 + pl.program_id(0) * block_rows)
        b_idx = lax.broadcasted_iota(jnp.int32, shape, 1)
        d_idx = lax.broadcasted_iota(jnp.int32, shape, 2)
        lin = (s_idx * batch + b_idx) * d_model + d_idx
        z = lin.astype(jnp.uint32) * jnp.uint32(0x9E3779B1)
        z = z ^ seed_ref[0].astype(jnp.uint32)
        bits = _splitmix32(z)
        # P(drop) = p; constants hoisted to trace time.
        threshold = jnp.uint32(min(int(round(p * float(2 ** 32))), 2 ** 32 - 1))
        keep = bits >= threshold
        scale = jnp.asarray(1.0 / (1.0 - p), dtype=y.dtype)
        # one select + one mul per vreg
        y = y * jnp.where(keep, scale, jnp.zeros_like(scale))
    o_ref[...] = y.astype(o_ref.dtype)


def make_positional_encoding_table(max_len, d_model, dtype=jnp.float32):
    """Builds the (max_len, 1, d_model) sinusoidal table (same math as torch)."""
    position = jnp.arange(max_len, dtype=jnp.float32)[:, None]          # (L, 1)
    div_term = jnp.exp(
        jnp.arange(0, d_model, 2, dtype=jnp.float32)
        * -(jnp.log(jnp.float32(10000.0)) / d_model)
    )                                                                   # (D/2,)
    pe = jnp.zeros((max_len, d_model), dtype=jnp.float32)
    pe = pe.at[:, 0::2].set(jnp.sin(position * div_term))
    pe = pe.at[:, 1::2].set(jnp.cos(position * div_term))
    return pe[:, None, :].astype(dtype)                                 # (L, 1, D)


def _choose_block_rows(S, B, D, itemsize, target_bytes=2 * 1024 * 1024):
    """~1-4 MiB per buffered x-block; 3 double-buffered streams stay well under
    the 32 MiB scoped-VMEM default on v5e/v6e/v7x."""
    rows = max(1, target_bytes // max(1, B * D * itemsize))
    rows = min(S, rows)
    if rows >= 8:
        rows = (rows // 8) * 8
    return int(rows)


def positional_encoding_forward(x, pe_table, *, p=0.1, seed=0, training=True):
    """x: (S, B, D). Returns dropout(x + pe[:S]) with the hot path in Pallas."""
    S, B, D = x.shape
    p_eff = float(p) if training else 0.0

    if p_eff <= 0.0:
        # Eval / no-dropout: pure broadcast add, let XLA fuse it (no kernel
        # launch / extra DMA overhead).
        return x + pe_table[:S].astype(x.dtype)
    if p_eff >= 1.0:
        return jnp.zeros_like(x)

    ts = _choose_block_rows(S, B, D, x.dtype.itemsize)
    grid = (pl.cdiv(S, ts),)
    seed_arr = jnp.array([seed], dtype=jnp.int32)

    kernel = functools.partial(
        _pe_dropout_kernel, p=p_eff, block_rows=ts, batch=B, d_model=D
    )
    return pl.pallas_call(
        kernel,
        out_shape=jax.ShapeDtypeStruct((S, B, D), x.dtype),
        grid_spec=pltpu.PrefetchScalarGridSpec(
            num_scalar_prefetch=1,               # seed lands in SMEM
            grid=grid,
            in_specs=[
                # x tiles: (TS, B, D); last two dims are the full array dims.
                pl.BlockSpec((ts, B, D), lambda i, seed: (i, 0, 0)),
                # PE table indexed directly by BlockSpec (no wrapper slice);
                # (TS, 1, D) tile is broadcast over batch inside the kernel.
                pl.BlockSpec((ts, 1, D), lambda i, seed: (i, 0, 0)),
            ],
            out_specs=pl.BlockSpec((ts, B, D), lambda i, seed: (i, 0, 0)),
        ),
        compiler_params=pltpu.CompilerParams(
            dimension_semantics=("parallel",),   # shard grid across v7x's 2 TCs
        ),
    )(seed_arr, x, pe_table)


if __name__ == "__main__":
    # Small shapes implied by the forward: (seq_len, batch, d_model)
    S, B, D = 8, 2, 32
    MAX_LEN = 64          # keep table small for the demo (module default: 5000)
    P_DROP = 0.1

    key = jax.random.PRNGKey(0)
    x = jax.random.normal(key, (S, B, D), dtype=jnp.float32)

    pe_table = make_positional_encoding_table(MAX_LEN, D, dtype=jnp.float32)

    # Training-mode forward (dropout active) -> runs the Pallas kernel.
    out_train = positional_encoding_forward(
        x, pe_table, p=P_DROP, seed=0, training=True
    )
    out_train = jax.block_until_ready(out_train)

    # Eval-mode forward (dropout = identity) -> plain-JAX fast path.
    out_eval = positional_encoding_forward(
        x, pe_table, p=P_DROP, seed=0, training=False
    )
    out_eval = jax.block_until_ready(out_eval)

    ref = x + pe_table[:S]
    assert out_train.shape == (S, B, D)
    assert jnp.allclose(out_eval, ref, atol=1e-6), "eval-mode mismatch"

    # Training mode: every element is either dropped (0) or (x + pe) / (1 - p).
    scaled = ref / (1.0 - P_DROP)
    ok = jnp.isclose(out_train, 0.0, atol=1e-6) | jnp.isclose(
        out_train, scaled, atol=1e-5, rtol=1e-5
    )
    assert bool(jnp.all(ok)), "training-mode values not in {0, (x+pe)/(1-p)}"

    print("KERNEL_OK")
</pallas_src>

<mosaic_0001>
module attributes {stable_mosaic.version = 11 : i64} {
  func.func @_pe_dropout_kernel(%arg0: i32, %arg1: memref<1xi32, #tpu.memory_space<smem>>, %arg2: memref<8x2x32xf32, #tpu.memory_space<vmem>>, %arg3: memref<8x1x32xf32, #tpu.memory_space<vmem>>, %arg4: memref<8x2x32xf32, #tpu.memory_space<vmem>>) attributes {dimension_semantics = [#tpu.dimension_semantics<parallel>], iteration_bounds = array<i64: 1>, scalar_prefetch = 1 : i64, scratch_operands = 0 : i64, tpu.core_type = #tpu.core_type<tc>, window_params = [{transform_indices = @transform_0, window_bounds = array<i64: 8, 2, 32>}, {transform_indices = @transform_1, window_bounds = array<i64: 8, 1, 32>}, {transform_indices = @transform_2, window_bounds = array<i64: 8, 2, 32>}]} {
    %c0 = arith.constant 0 : index
    %c0_0 = arith.constant 0 : index
    %c0_1 = arith.constant 0 : index
    %0 = vector.load %arg2[%c0, %c0_0, %c0_1] : memref<8x2x32xf32, #tpu.memory_space<vmem>>, vector<8x2x32xf32>
    %c0_2 = arith.constant 0 : index
    %c0_3 = arith.constant 0 : index
    %c0_4 = arith.constant 0 : index
    %1 = vector.load %arg3[%c0_2, %c0_3, %c0_4] : memref<8x1x32xf32, #tpu.memory_space<vmem>>, vector<8x1x32xf32>
    %2 = vector.broadcast %1 : vector<8x1x32xf32> to vector<8x2x32xf32>
    %3 = arith.addf %0, %2 : vector<8x2x32xf32>
    %4 = tpu.iota {dimensions = array<i32: 0>} : vector<8x2x32xi32>
    %c8_i32 = arith.constant 8 : i32
    %5 = arith.muli %arg0, %c8_i32 : i32
    %6 = vector.broadcast %5 : i32 to vector<8x2x32xi32>
    %7 = arith.addi %4, %6 : vector<8x2x32xi32>
    %8 = tpu.iota {dimensions = array<i32: 1>} : vector<8x2x32xi32>
    %9 = tpu.iota {dimensions = array<i32: 2>} : vector<8x2x32xi32>
    %c2_i32 = arith.constant 2 : i32
    %10 = vector.broadcast %c2_i32 : i32 to vector<8x2x32xi32>
    %11 = arith.muli %7, %10 : vector<8x2x32xi32>
    %12 = arith.addi %11, %8 : vector<8x2x32xi32>
    %c32_i32 = arith.constant 32 : i32
    %13 = vector.broadcast %c32_i32 : i32 to vector<8x2x32xi32>
    %14 = arith.muli %12, %13 : vector<8x2x32xi32>
    %15 = arith.addi %14, %9 : vector<8x2x32xi32>
    %c-1640531535_i32 = arith.constant -1640531535 : i32
    %16 = vector.broadcast %c-1640531535_i32 : i32 to vector<8x2x32xi32>
    %17 = arith.muli %15, %16 : vector<8x2x32xi32>
    %c0_5 = arith.constant 0 : index
    %18 = memref.load %arg1[%c0_5] : memref<1xi32, #tpu.memory_space<smem>>
    %19 = vector.broadcast %18 : i32 to vector<8x2x32xi32>
    %20 = arith.xori %17, %19 : vector<8x2x32xi32>
    %c16_i32 = arith.constant 16 : i32
    %21 = vector.broadcast %c16_i32 : i32 to vector<8x2x32xi32>
    %22 = arith.shrui %20, %21 : vector<8x2x32xi32>
    %23 = arith.xori %20, %22 : vector<8x2x32xi32>
    %c-2048144789_i32 = arith.constant -2048144789 : i32
    %24 = vector.broadcast %c-2048144789_i32 : i32 to vector<8x2x32xi32>
    %25 = arith.muli %23, %24 : vector<8x2x32xi32>
    %c13_i32 = arith.constant 13 : i32
    %26 = vector.broadcast %c13_i32 : i32 to vector<8x2x32xi32>
    %27 = arith.shrui %25, %26 : vector<8x2x32xi32>
    %28 = arith.xori %25, %27 : vector<8x2x32xi32>
    %c-1028477387_i32 = arith.constant -1028477387 : i32
    %29 = vector.broadcast %c-1028477387_i32 : i32 to vector<8x2x32xi32>
    %30 = arith.muli %28, %29 : vector<8x2x32xi32>
    %c16_i32_6 = arith.constant 16 : i32
    %31 = vector.broadcast %c16_i32_6 : i32 to vector<8x2x32xi32>
    %32 = arith.shrui %30, %31 : vector<8x2x32xi32>
    %33 = arith.xori %30, %32 : vector<8x2x32xi32>
    %c429496730_i32 = arith.constant 429496730 : i32
    %34 = vector.broadcast %c429496730_i32 : i32 to vector<8x2x32xi32>
    %35 = arith.cmpi uge, %33, %34 : vector<8x2x32xi32>
    %cst = arith.constant 1.11111116 : f32
    %cst_7 = arith.constant 0.000000e+00 : f32
    %36 = vector.broadcast %cst : f32 to vector<8x2x32xf32>
    %37 = vector.broadcast %cst_7 : f32 to vector<8x2x32xf32>
    %38 = arith.select %35, %36, %37 : vector<8x2x32xi1>, vector<8x2x32xf32>
    %39 = arith.mulf %3, %38 : vector<8x2x32xf32>
    %c0_8 = arith.constant 0 : index
    %c0_9 = arith.constant 0 : index
    %c0_10 = arith.constant 0 : index
    %40 = vector.load %arg4[%c0_8, %c0_9, %c0_10] : memref<8x2x32xf32, #tpu.memory_space<vmem>>, vector<8x2x32xf32>
    tpu.vector_store %arg4[%c0_8, %c0_9, %c0_10], %39 {strides = array<i32>} : memref<8x2x32xf32, #tpu.memory_space<vmem>>, vector<8x2x32xf32>,
    return
  }
  func.func @transform_0(%arg0: i32, %arg1: memref<1xi32, #tpu.memory_space<smem>>) -> (i32, i32, i32) {
    %c0_i32 = arith.constant 0 : i32
    %c0_i32_0 = arith.constant 0 : i32
    %c0_i32_1 = arith.constant 0 : i32
    return %arg0, %c0_i32, %c0_i32_0 : i32, i32, i32
  }
  func.func @transform_1(%arg0: i32, %arg1: memref<1xi32, #tpu.memory_space<smem>>) -> (i32, i32, i32) {
    %c0_i32 = arith.constant 0 : i32
    %c0_i32_0 = arith.constant 0 : i32
    %c0_i32_1 = arith.constant 0 : i32
    return %arg0, %c0_i32, %c0_i32_0 : i32, i32, i32
  }
  func.func @transform_2(%arg0: i32, %arg1: memref<1xi32, #tpu.memory_space<smem>>) -> (i32, i32, i32) {
    %c0_i32 = arith.constant 0 : i32
    %c0_i32_0 = arith.constant 0 : i32
    %c0_i32_1 = arith.constant 0 : i32
    return %arg0, %c0_i32, %c0_i32_0 : i32, i32, i32
  }
}

</mosaic_0001>

<bundles_post_ra>
// kernel: tpu_custom_call.1
= control target key start
LH: loop header
LB: loop body
LE: loop exit
PB: predicated region body
PF: predicated region fallthrough
CT: control target
= control target key end

     0   :  { %v95_v2 = vlaneseq  ;;  %s421_s0 = inlined_call_operand.<no memory space> [shape: s32[1], index: 0, kind: input, shape index: {}]   ;;  %s422_s1 = inlined_call_operand.vmem [shape: f32[8,2,32], index: 1, kind: input, shape index: {}]   ;;  %s423_s2 = inlined_call_operand.vmem [shape: f32[64,1,32], index: 2, kind: input, shape index: {}]   ;;  %s424_s3 = inlined_call_operand.hbm [shape: f32[8,2,32], index: 3, kind: output, shape index: {}]  }
   0x1   :  { %v14_v0 = vld [vmem:[%s422_s1] sm:$0x3]  ;;  %v15_v3 = vld [vmem:[%s422_s1 + $0x2] sm:$0x3]  ;;  %v16_v7 = vld [vmem:[%s422_s1 + $0x4] sm:$0x3]  ;;  %v345_v10 = vstv %s421_s0 }
   0x2   :  { %v262_v1 = vld [vmem:[%s423_s2] ss:$0 sm:$0xff]  ;;  %v263_v4 = vld [vmem:[%s423_s2 + $0x1] ss:$0 sm:$0xff]  ;;  %v96_v5 = vshrl.u32 %v95_v2, 7  ;;  %v98_v6 = vand.u32 127, %v95_v2 }
   0x3   :  { %v264_v8 = vld [vmem:[%s423_s2 + $0x2] ss:$0 sm:$0xff]  ;;  %v340_v9 = vadd.f32 %v262_v1, %v14_v0  ;;  %v17_v11 = vld [vmem:[%s422_s1 + $0x6] sm:$0x3]  ;;  %v265_v12 = vld [vmem:[%s423_s2 + $0x3] ss:$0 sm:$0xff]  ;;  %v356_v15 = vadd.f32 %v263_v4, %v15_v3 }
   0x4   :  { %v18_v13 = vld [vmem:[%s422_s1 + $0x8] sm:$0x3]  ;;  %v115_v14 = vmul.u32 32, %v96_v5  ;;  %v108_v16 = vadd.s32 2, %v96_v5  ;;  %v109_v17 = vadd.s32 4, %v96_v5  ;;  %v361_v19 = vadd.f32 %v264_v8, %v16_v7 }
   0x5   :  { %v266_v18 = vld [vmem:[%s423_s2 + $0x4] ss:$0 sm:$0xff]  ;;  %v110_v20 = vadd.s32 6, %v96_v5  ;;  %v111_v21 = vadd.s32 8, %v96_v5  ;;  %v112_v22 = vadd.s32 10, %v96_v5  ;;  %v363_v26 = vadd.f32 %v265_v12, %v17_v11 }
   0x6   :  { %v123_v23 = vadd.s32 %v115_v14, %v98_v6  ;;  %v116_v24 = vmul.u32 32, %v108_v16  ;;  %v117_v25 = vmul.u32 32, %v109_v17  ;;  %v19_v27 = vld [vmem:[%s422_s1 + $0xa] sm:$0x3]  ;;  %v267_v28 = vld [vmem:[%s423_s2 + $0x5] ss:$0 sm:$0xff]  ;;  %v371_v30 = vadd.f32 %v266_v18, %v18_v13 }
   0x7   :  { %v118_v29 = vmul.u32 32, %v110_v20  ;;  %v119_v31 = vmul.u32 32, %v111_v21  ;;  %v113_v32 = vadd.s32 12, %v96_v5  ;;  %v373_v39 = vadd.f32 %v267_v28, %v19_v27 }
   0x8   :  { %v131_v33 = vmul.u32 2654435761, %v123_v23  ;;  %v124_v34 = vadd.s32 %v116_v24, %v98_v6  ;;  %v125_v35 = vadd.s32 %v117_v25, %v98_v6  ;;  %v120_v36 = vmul.u32 32, %v112_v22 }
   0x9   :  { %v126_v37 = vadd.s32 %v118_v29, %v98_v6  ;;  %v127_v38 = vadd.s32 %v119_v31, %v98_v6  ;;  %v121_v40 = vmul.u32 32, %v113_v32 }
   0xa   :  { %9 = vsyncpa [#allocation5], 0  ;;  %v141_v41 = vxor.u32 %v345_v10, %v131_v33  ;;  %v132_v42 = vmul.u32 2654435761, %v124_v34  ;;  %v133_v43 = vmul.u32 2654435761, %v125_v35  ;;  %v128_v44 = vadd.s32 %v120_v36, %v98_v6 }
   0xb   :  { %v134_v45 = vmul.u32 2654435761, %v126_v37  ;;  %v135_v46 = vmul.u32 2654435761, %v127_v38  ;;  %v129_v47 = vadd.s32 %v121_v40, %v98_v6  ;;  %v114_v48 = vadd.s32 14, %v96_v5  ;;  %s299_s18 = smov [#allocation4]  }
   0xc   :  { %v149_v49 = vshrl.u32 %v141_v41, 16  ;;  %v142_v50 = vxor.u32 %v345_v10, %v132_v42  ;;  %v143_v51 = vxor.u32 %v345_v10, %v133_v43  ;;  %v136_v52 = vmul.u32 2654435761, %v128_v44  ;;  %v20_v25 = vld [vmem:[%s422_s1 + $0xc] sm:$0x3]  ;;  %s251_s19 = sshll.u32 %s299_s18, 4  ;;  %s252_s19 = int_to_ptr.vmem [resolvable:$true] %s251_s19 }
   0xd   :  { %v144_v53 = vxor.u32 %v345_v10, %v134_v45  ;;  %v145_v54 = vxor.u32 %v345_v10, %v135_v46  ;;  %v137_v55 = vmul.u32 2654435761, %v129_v47  ;;  %v122_v56 = vmul.u32 32, %v114_v48  ;;  %s274_s20 = scalar_lea.vmem %s252_s19, 256  ;;  %p279_p1 = scmp.lt.s32.totalorder %s252_s19, %s252_s19 }
   0xe   :  { %v157_v57 = vxor.u32 %v149_v49, %v141_v41  ;;  %v150_v58 = vshrl.u32 %v142_v50, 16  ;;  %v151_v59 = vshrl.u32 %v143_v51, 16  ;;  %v146_v60 = vxor.u32 %v345_v10, %v136_v52  ;;  %p275_p0 = scmp.ne.s32.totalorder %s252_s19, %s274_s20  ;;  %p280_p2 = scmp.lt.s32.totalorder %s274_s20, %s274_s20 }
   0xf   :  { %v152_v61 = vshrl.u32 %v144_v53, 16  ;;  %v153_v62 = vshrl.u32 %v145_v54, 16  ;;  %v147_v63 = vxor.u32 %v345_v10, %v137_v55  ;;  %v130_v0 = vadd.s32 %v122_v56, %v98_v6 }
  0x10   :  { %v165_v1 = vmul.u32 2246822507, %v157_v57  ;;  %v158_v2 = vxor.u32 %v150_v58, %v142_v50  ;;  %v159_v3 = vxor.u32 %v151_v59, %v143_v51  ;;  %v154_v4 = vshrl.u32 %v146_v60, 16  ;;  %p281_p3 = por %p280_p2, %p279_p1 }
  0x11   :  { %v160_v5 = vxor.u32 %v152_v61, %v144_v53  ;;  %v161_v7 = vxor.u32 %v153_v62, %v145_v54  ;;  %v155_v8 = vshrl.u32 %v147_v63, 16  ;;  %v138_v11 = vmul.u32 2654435761, %v130_v0 }
  0x12   :  { %v173_v12 = vshrl.u32 %v165_v1, 13  ;;  %v166_v13 = vmul.u32 2246822507, %v158_v2  ;;  %v167_v14 = vmul.u32 2246822507, %v159_v3  ;;  %v162_v16 = vxor.u32 %v154_v4, %v146_v60  ;;  %p282_p4 = pnand %p281_p3, %p275_p0 }
  0x13   :  { %v168_v17 = vmul.u32 2246822507, %v160_v5  ;;  %v169_v18 = vmul.u32 2246822507, %v161_v7  ;;  %v163_v20 = vxor.u32 %v155_v8, %v147_v63  ;;  %v148_v21 = vxor.u32 %v345_v10, %v138_v11  ;;  %v268_v10 = vld [vmem:[%s423_s2 + $0x6] ss:$0 sm:$0xff] }
  0x14   :  { %v181_v22 = vxor.u32 %v173_v12, %v165_v1  ;;  %v174_v23 = vshrl.u32 %v166_v13, 13  ;;  %v175_v6 = vshrl.u32 %v167_v14, 13  ;;  %v170_v24 = vmul.u32 2246822507, %v162_v16 }
  0x15   :  { %vm237_vm0 = vcmask 254976   ;;  %v176_v27 = vshrl.u32 %v168_v17, 13  ;;  %v177_v28 = vshrl.u32 %v169_v18, 13  ;;  %v171_v29 = vmul.u32 2246822507, %v163_v20 }
  0x16   :  { %v156_v31 = vshrl.u32 %v148_v21, 16  ;;  %v189_v32 = vmul.u32 3266489909, %v181_v22  ;;  %v182_v33 = vxor.u32 %v174_v23, %v166_v13  ;;  %v183_v34 = vxor.u32 %v175_v6, %v167_v14  ;;  %v269_v20 = vld [vmem:[%s423_s2 + $0x7] ss:$0 sm:$0xff] }
  0x17   :  { %v178_v35 = vshrl.u32 %v170_v24, 13  ;;  %v184_v36 = vxor.u32 %v176_v27, %v168_v17  ;;  %v185_v37 = vxor.u32 %v177_v28, %v169_v18  ;;  %v179_v38 = vshrl.u32 %v171_v29, 13 }
  0x18   :  { %v164_v40 = vxor.u32 %v156_v31, %v148_v21  ;;  %v197_v41 = vshrl.u32 %v189_v32, 16  ;;  %v190_v42 = vmul.u32 3266489909, %v182_v33  ;;  %v191_v43 = vmul.u32 3266489909, %v183_v34 }
  0x19   :  { %v186_v44 = vxor.u32 %v178_v35, %v170_v24  ;;  %v192_v45 = vmul.u32 3266489909, %v184_v36  ;;  %v193_v46 = vmul.u32 3266489909, %v185_v37  ;;  %v84_v47 = vadd.f32 %v268_v10, %v20_v25 }
  0x1a   :  { %v187_v48 = vxor.u32 %v179_v38, %v171_v29  ;;  %v205_v49 = vxor.u32 %v197_v41, %v189_v32  ;;  %v198_v50 = vshrl.u32 %v190_v42, 16  ;;  %v199_v51 = vshrl.u32 %v191_v43, 16 }
  0x1b   :  { %v194_v52 = vmul.u32 3266489909, %v186_v44  ;;  %v200_v53 = vshrl.u32 %v192_v45, 16  ;;  %v201_v54 = vshrl.u32 %v193_v46, 16  ;;  %v172_v56 = vmul.u32 2246822507, %v164_v40 }
  0x1c   :  { %v195_v55 = vmul.u32 3266489909, %v187_v48  ;;  %vm213_vm1 = vcmp.ge.u32.totalorder %v205_v49, 429496730  ;;  %v206_v57 = vxor.u32 %v198_v50, %v190_v42  ;;  %v207_v58 = vxor.u32 %v199_v51, %v191_v43 }
  0x1d   :  { %v202_v59 = vshrl.u32 %v194_v52, 16  ;;  %v298_v60 = vmov 0.0   ;;  %v208_v62 = vxor.u32 %v200_v53, %v192_v45  ;;  %v209_v63 = vxor.u32 %v201_v54, %v193_v46 }
  0x1e   :  { %v221_v61 = vsel %vm213_vm1, 1.1111112, %v298_v60  ;;  %v203_v0 = vshrl.u32 %v195_v55, 16  ;;  %vm214_vm2 = vcmp.ge.u32.totalorder %v206_v57, 429496730  ;;  %v180_v17 = vshrl.u32 %v172_v56, 13 }
  0x1f   :  { %v229_v1 = vmul.f32 %v221_v61, %v340_v9  ;;  %vm215_vm3 = vcmp.ge.u32.totalorder %v207_v58, 429496730  ;;  %v210_v2 = vxor.u32 %v202_v59, %v194_v52  ;;  %v222_v3 = vsel %vm214_vm2, 1.1111112, %v298_v60 }
  0x20   :  { %v223_v4 = vsel %vm215_vm3, 1.1111112, %v298_v60  ;;  %vm216_vm4 = vcmp.ge.u32.totalorder %v208_v62, 429496730  ;;  %v211_v5 = vxor.u32 %v203_v0, %v195_v55  ;;  %v230_v7 = vmul.f32 %v222_v3, %v356_v15 }
  0x21   :  { %238 = vst.msk [vmem:[#allocation4] sm:$0x3] %vm237_vm0, %v229_v1  ;;  %v231_v8 = vmul.f32 %v223_v4, %v361_v19  ;;  %v224_v11 = vsel %vm216_vm4, 1.1111112, %v298_v60  ;;  %vm217_vm5 = vcmp.ge.u32.totalorder %v209_v63, 429496730 }
  0x22   :  { %v232_v12 = vmul.f32 %v224_v11, %v363_v26  ;;  %v225_v13 = vsel %vm217_vm5, 1.1111112, %v298_v60  ;;  %vm218_vm6 = vcmp.ge.u32.totalorder %v210_v2, 429496730  ;;  %vm219_vm7 = vcmp.ge.u32.totalorder %v211_v5, 429496730 }
  0x23   :  { %239 = vst.msk [vmem:[#allocation4 + $0x2] sm:$0x3] %vm237_vm0, %v230_v7  ;;  %240 = vst.msk [vmem:[#allocation4 + $0x4] sm:$0x3] %vm237_vm0, %v231_v8  ;;  %v233_v9 = vmul.f32 %v225_v13, %v371_v30  ;;  %v226_v14 = vsel %vm218_vm6, 1.1111112, %v298_v60  ;;  %v188_v26 = vxor.u32 %v180_v17, %v172_v56 }
  0x24   :  { %v227_v16 = vsel %vm219_vm7, 1.1111112, %v298_v60  ;;  %241 = vst.msk [vmem:[#allocation4 + $0x6] sm:$0x3] %vm237_vm0, %v232_v12  ;;  %v234_v15 = vmul.f32 %v226_v14, %v373_v39  ;;  %v21_v30 = vld [vmem:[%s422_s1 + $0xe] sm:$0x3] }
  0x25   :  { %v235_v19 = vmul.f32 %v227_v16, %v84_v47  ;;  %242 = vst.msk [vmem:[#allocation4 + $0x8] sm:$0x3] %vm237_vm0, %v233_v9  ;;  %v196_v18 = vmul.u32 3266489909, %v188_v26  ;;  %v85_v22 = vadd.f32 %v269_v20, %v21_v30 }
  0x26   :  { %243 = vst.msk [vmem:[#allocation4 + $0xa] sm:$0x3] %vm237_vm0, %v234_v15 }
  0x27   :  { %244 = vst.msk [vmem:[#allocation4 + $0xc] sm:$0x3] %vm237_vm0, %v235_v19  ;;  %v204_v21 = vshrl.u32 %v196_v18, 16 }
  0x29   :  { %v212_v39 = vxor.u32 %v204_v21, %v196_v18 }
  0x2b   :  { %vm220_vm8 = vcmp.ge.u32.totalorder %v212_v39, 429496730 }
  0x2c   :  { %v228_v23 = vsel %vm220_vm8, 1.1111112, %v298_v60 }
  0x2d   :  { %v236_v6 = vmul.f32 %v228_v23, %v85_v22 }
  0x2f   :  { %245 = vst.msk [vmem:[#allocation4 + $0xe] sm:$0x3] %vm237_vm0, %v236_v6 }
  0x30   :  { %285 = shalt.err (!%p282_p4)
}
  0x31   :  { %s286_s21 = scalar_lea.hbm %s424_s3, 256 }
  0x32   :  { %p287_p5 = scmp.ne.s32.totalorder %s424_s3, %s286_s21  ;;  %p290_p6 = scmp.lt.u32.totalorder %s286_s21, %s424_s3 }
  0x34   :  { %p292_p7 = pnand %p290_p6, %p287_p5 }
  0x36   :  { %295 = shalt.err (!%p292_p7)
}
  0x37   :  { %s300_s26 = smov 32   ;;  %s301_s27 = smov 2  }
  0x38   :  { %257 = dma.vmem_to_hbm [thread:$0]  %s252_s19, 256, %s424_s3, [#allocation5], %s300_s26, %s300_s26, %s301_s27  }
  0x39   :  { %296 = dma.done.wait [#allocation5], 256  }
  0x3a   :  { %297 = vsyncadd [#allocation5], 4294967040 }
  0x3b   :  { %261 = vsyncpa [#allocation5], 1 }

</bundles_post_ra>
